<compile_context>
chip_gen: v7x
topology: tpu7x:2x2x1
jax: 0.10.0
libtpu: 0.0.40
codegen_flags: <defaults>
</compile_context>

<pallas_src>
import functools

import jax
import jax.numpy as jnp
from jax.experimental import pallas as pl
from jax.experimental.pallas import tpu as pltpu


def _round_up(a, m):
    return ((a + m - 1) // m) * m


def _gelu(x, approximate=False):
    if approximate:
        # tanh-approx GELU runs on the EUP (own VLIW slot); ~1e-3 off torch's
        # exact erf GELU — negligible next to the sigma=0.05 top-k perturbation.
        return jax.nn.gelu(x, approximate=True)
    return 0.5 * x * (1.0 + jax.lax.erf(x * 0.7071067811865476))


def _layernorm(x, gamma, beta, eps=1e-5):
    xf = x.astype(jnp.float32)
    mean = jnp.mean(xf, axis=-1, keepdims=True)
    xc = xf - mean
    var = jnp.mean(xc * xc, axis=-1, keepdims=True)
    return xc * jax.lax.rsqrt(var + eps) * gamma + beta


# ----------------------------------------------------------------------------
# PredictorLG score kernel
# ----------------------------------------------------------------------------

def predictor_kernel(x_ref, zg_ref, w1_ref, b1_ref, w2a_ref, w3_ref, out_ref,
                     *, gelu_approx):
    TB, TN, D = x_ref.shape
    C = w1_ref.shape[1]
    mxu_dtype = w1_ref.dtype                      # bf16 (default) or f32

    # (TB, TN, D) -> (TB*TN, D) slab; upcast to f32 for LayerNorm on the VPU.
    x = x_ref[...].reshape(TB * TN, D).astype(jnp.float32)

    # LayerNorm (eps=1e-5, biased var — torch semantics); affine is folded into
    # w1/b1.  Zero-padded rows give xc == 0 -> xn == 0 (finite, sliced off by
    # the wrapper).
    mean = jnp.mean(x, axis=-1, keepdims=True)
    xc = x - mean
    var = jnp.mean(xc * xc, axis=-1, keepdims=True)
    xn = xc * jax.lax.rsqrt(var + 1e-5)                                    # (TB*TN, D)

    # in_conv: gelu( LN(x) @ (gamma*w1) + beta@w1 )  — one big MXU matmul.
    y = _gelu(jnp.dot(xn.astype(mxu_dtype), w1_ref[...],
                      preferred_element_type=jnp.float32) + b1_ref[...],
              gelu_approx)                                                 # (TB*TN, C)

    # out_conv[0]: cat([local, global]) @ W2 == local @ W2a + global @ W2b.
    # The global-token term zg (= gelu(LN(x[:,0])@w1) @ W2b) is precomputed in
    # the wrapper — it was the only cross-token dependency.
    zl = jnp.dot(y.astype(mxu_dtype), w2a_ref[...],
                 preferred_element_type=jnp.float32)                       # (TB*TN, C)
    z = _gelu(zl.reshape(TB, TN, C) + zg_ref[...][:, None, :], gelu_approx)

    # out_conv[2..3]: Linear(C->1, no bias) + tanh as VPU multiply + lane reduce
    # -> lane-dense (TB, TN) f32 scores (no width-1 MXU pass).
    s = jnp.tanh(jnp.sum(z * w3_ref[...], axis=-1))                        # (TB, TN)
    out_ref[...] = s.astype(out_ref.dtype)


def predictor_scores(x, gamma, beta, w1, w2, w3, *, batch_tile=8, token_tile=256,
                     mxu_dtype=None, gelu_approx=False):
    """PredictorLG scores, already squeezed: x (B, N, D) -> f32 (B, N).

    mxu_dtype=None defaults to bf16 MXU operands on every TPU generation
    (including v5e — only matmul operands are bf16; LN/GELU/tanh stay f32 on
    the VPU/EUP). Pass jnp.float32 for a bit-tighter match to the reference.
    """
    B, N, D = x.shape
    C = w1.shape[1]
    assert w1.shape == (D, C) and w2.shape == (2 * C, C) and w3.shape == (C, 1)

    if mxu_dtype is None:
        mxu_dtype = jnp.bfloat16
    mxu_dtype = jnp.dtype(mxu_dtype)

    # ---- weight prep (once, outside the kernel) ------------------------------
    gamma32 = gamma.astype(jnp.float32)
    beta32 = beta.astype(jnp.float32)
    w1_32 = w1.astype(jnp.float32)
    w2b_32 = w2[C:, :].astype(jnp.float32)
    # Fold LayerNorm affine into the first matmul: (xn*g+b)@w1 == xn@(g*w1)+b@w1.
    w1f = (gamma32[:, None] * w1_32).astype(mxu_dtype)                 # (D, C)
    b1 = (beta32 @ w1_32).reshape(1, C).astype(jnp.float32)           # (1, C)
    w2a = w2[:C, :].astype(mxu_dtype)                                  # (C, C)
    w3row = w3.reshape(1, C).astype(jnp.float32)                       # (1, C)

    # Global-token term (tiny: B x D x C), plain JAX / f32.
    zg = _gelu(_layernorm(x[:, 0, :], gamma32, beta32) @ w1_32,
               gelu_approx) @ w2b_32                                   # (B, C) f32

    # Ship x as bf16 when the MXU runs bf16: halves HBM traffic + x VMEM block.
    x_in = x.astype(jnp.bfloat16) if mxu_dtype == jnp.bfloat16 else x

    # ---- token tiling (lane-dense, unmasked stores when N >= 128) -----------
    if N < 128:
        N_pad = _round_up(N, 8)       # tiny token dim: one (8-aligned) full tile
        tn = N_pad
    else:
        N_pad = _round_up(N, 128)
        nc = N_pad // 128
        c = max(f for f in range(1, nc + 1)
                if nc % f == 0 and f * 128 <= max(128, token_tile))
        tn = c * 128

    # ---- batch tiling --------------------------------------------------------
    tb = min(batch_tile, B)
    if tb < B:
        # 8 is the sublane quantum when the batch is tiled; only exceeds the
        # caller's batch_tile if batch_tile < 8.
        tb = max(8, (tb // 8) * 8)

    # ---- size tb against a generation-safe VMEM budget -----------------------
    x_item = jnp.dtype(x_in.dtype).itemsize
    w_bytes = (D * C + C * C) * mxu_dtype.itemsize + 2 * C * 4

    def _vmem_est(tb_):
        return (2 * tb_ * tn * D * x_item            # double-buffered x block
                + 2 * tb_ * (C + tn) * 4             # zg + score blocks
                + 2 * w_bytes                        # (double-buffered) weights
                + tb_ * tn * (D + 3 * C) * 4)        # live f32 intermediates

    VMEM_BUDGET = 40 * 2 ** 20                       # fits v5e/v6e/v7x w/ headroom
    while tb > 8 and _vmem_est(tb) > VMEM_BUDGET:
        tb = max(8, (tb // 2) // 8 * 8)
    B_pad = B if tb == B else _round_up(B, tb)

    if B_pad != B or N_pad != N:
        x_in = jnp.pad(x_in, ((0, B_pad - B), (0, N_pad - N), (0, 0)))
    if B_pad != B:
        zg = jnp.pad(zg, ((0, B_pad - B), (0, 0)))
    zg = zg.astype(jnp.float32)

    vmem_limit = int(min(64 * 2 ** 20,
                         max(16 * 2 ** 20, _vmem_est(tb) * 5 // 4 + (4 << 20))))

    grid = (B_pad // tb, N_pad // tn)
    kernel = functools.partial(predictor_kernel, gelu_approx=gelu_approx)

    # NOTE: the weight specs are grid-invariant; on VMEM-tight v7x they could
    # additionally take pipeline_mode=pl.Buffered(1) (saves <1 MiB) — left at
    # the default double-buffering for portability.
    scores = pl.pallas_call(
        kernel,
        out_shape=jax.ShapeDtypeStruct((B_pad, N_pad), jnp.float32),
        grid_spec=pltpu.PrefetchScalarGridSpec(
            num_scalar_prefetch=0,
            grid=grid,
            in_specs=[
                pl.BlockSpec((tb, tn, D), lambda b, n: (b, n, 0)),   # x tile
                pl.BlockSpec((tb, C), lambda b, n: (b, 0)),          # zg (global term)
                pl.BlockSpec((D, C), lambda b, n: (0, 0)),           # w1 (folded, invariant)
                pl.BlockSpec((1, C), lambda b, n: (0, 0)),           # b1 (invariant)
                pl.BlockSpec((C, C), lambda b, n: (0, 0)),           # w2a (invariant)
                pl.BlockSpec((1, C), lambda b, n: (0, 0)),           # w3 row (invariant)
            ],
            out_specs=pl.BlockSpec((tb, tn), lambda b, n: (b, n)),   # lane-dense f32 scores
        ),
        compiler_params=pltpu.CompilerParams(
            dimension_semantics=("parallel", "parallel"),
            vmem_limit_bytes=vmem_limit),
    )(x_in, zg, w1f, b1, w2a, w3row)
    return scores[:B, :N]


def predictor_scores_ref(x, gamma, beta, w1, w2, w3):
    """Plain-JAX reference mirroring the PyTorch PredictorLG forward (squeezed)."""
    xn = _layernorm(x, gamma.astype(jnp.float32), beta.astype(jnp.float32))
    y = _gelu(xn @ w1.astype(jnp.float32))                         # (B, N, C)
    B, N, C = y.shape
    g = jnp.broadcast_to(y[:, :1, :], (B, N, C))
    cat = jnp.concatenate([y, g], axis=-1)                          # (B, N, 2C)
    z = _gelu(cat @ w2.astype(jnp.float32))                         # (B, N, C)
    return jnp.tanh(z @ w3.astype(jnp.float32))[..., 0]            # (B, N) f32


# ----------------------------------------------------------------------------
# PerturbedTopK + token selection (plain JAX around the kernel)
# ----------------------------------------------------------------------------

def perturbed_topk_indicators(scores, key, k, *, num_samples=256, sigma=0.05):
    """topk_indicators of PerturbedTopKFunction: (b, k, d) via scatter-add.

    (non_topk_indicators are unused by VisualTokenSelection.forward and are not
    computed.)  mean(one_hot(idx)) is replaced by an equivalent scatter-add of
    1/num_samples — no (b, num_samples, k, d) one-hot tensor is materialized.
    """
    b, d = scores.shape
    scores32 = scores.astype(jnp.float32)
    noise = jax.random.normal(key, (b, num_samples, d), dtype=jnp.float32)
    perturbed = scores32[:, None, :] + noise * sigma                # (b, ns, d)
    _, indices = jax.lax.top_k(perturbed, k)                        # (b, ns, k)
    sorted_indices = jnp.sort(indices, axis=-1)
    b_idx = jnp.arange(b)[:, None, None]
    k_idx = jnp.arange(k)[None, None, :]
    upd = jnp.full(sorted_indices.shape, 1.0 / num_samples, dtype=jnp.float32)
    ind = jnp.zeros((b, k, d), dtype=jnp.float32)
    return ind.at[b_idx, k_idx, sorted_indices].add(upd)            # (b, k, d)


def _assemble_output(xf, pred_score, noise_key, *, topk, num_samples, sigma,
                     B, max_frames):
    spatial_score = pred_score[:, 1:]                               # (B', N-1) f32
    topk_ind = perturbed_topk_indicators(
        spatial_score, noise_key, topk, num_samples=num_samples, sigma=sigma)
    cls_x = xf[:, :1, :]                                            # (B', 1, D)
    spatial_x = xf[:, 1:, :].astype(jnp.float32)                    # (B', N-1, D)
    selected = jnp.einsum('bkl,bld->bkd', topk_ind, spatial_x).astype(xf.dtype)
    out = jnp.concatenate([cls_x, selected], axis=1)                # (B', 1+k, D)
    return out.reshape(B, max_frames * (1 + topk), xf.shape[-1])


def visual_token_selection(x, params, noise_key, *, max_frames, topk,
                           num_samples=256, sigma=0.05, mxu_dtype=None,
                           gelu_approx=False):
    """Full VisualTokenSelection.forward; scores come from the Pallas kernel."""
    gamma, beta, w1, w2, w3 = params
    B, L, D = x.shape
    N = L // max_frames
    xf = x.reshape(B * max_frames, N, D)
    pred_score = predictor_scores(xf, gamma, beta, w1, w2, w3,
                                  mxu_dtype=mxu_dtype, gelu_approx=gelu_approx)
    return _assemble_output(xf, pred_score, noise_key, topk=topk,
                            num_samples=num_samples, sigma=sigma,
                            B=B, max_frames=max_frames)


def visual_token_selection_ref(x, params, noise_key, *, max_frames, topk,
                               num_samples=256, sigma=0.05):
    """Plain-JAX end-to-end reference (same noise key)."""
    gamma, beta, w1, w2, w3 = params
    B, L, D = x.shape
    N = L // max_frames
    xf = x.reshape(B * max_frames, N, D)
    pred_score = predictor_scores_ref(xf, gamma, beta, w1, w2, w3)
    return _assemble_output(xf, pred_score, noise_key, topk=topk,
                            num_samples=num_samples, sigma=sigma,
                            B=B, max_frames=max_frames)


# ----------------------------------------------------------------------------
# Demo / self-check
# ----------------------------------------------------------------------------

if __name__ == "__main__":
    bs, max_frames, n_tok, D, k_sel = 2, 2, 8, 32, 3   # small demo shapes
    C = D // 2
    L = max_frames * n_tok

    key = jax.random.PRNGKey(0)
    kx, kg, kb, k1, k2, k3, kn, kx2 = jax.random.split(key, 8)

    x = jax.random.normal(kx, (bs, L, D), dtype=jnp.float32)
    gamma = 1.0 + 0.1 * jax.random.normal(kg, (D,), dtype=jnp.float32)
    beta = 0.1 * jax.random.normal(kb, (D,), dtype=jnp.float32)
    w1 = jax.random.normal(k1, (D, C), dtype=jnp.float32) * (1.0 / jnp.sqrt(D))
    w2 = jax.random.normal(k2, (2 * C, C), dtype=jnp.float32) * (1.0 / jnp.sqrt(2 * C))
    w3 = jax.random.normal(k3, (C, 1), dtype=jnp.float32) * (1.0 / jnp.sqrt(C))
    params = (gamma, beta, w1, w2, w3)

    xf = x.reshape(bs * max_frames, n_tok, D)

    # 1) f32 MXU path vs reference (tight; rounding reorder from the folded LN).
    scores_f32 = jax.block_until_ready(
        predictor_scores(xf, *params, mxu_dtype=jnp.float32))
    scores_ref = predictor_scores_ref(xf, *params)
    assert scores_f32.shape == (bs * max_frames, n_tok), scores_f32.shape
    assert jnp.allclose(scores_f32, scores_ref, atol=1e-4, rtol=1e-4), \
        float(jnp.max(jnp.abs(scores_f32 - scores_ref)))

    # 2) default bf16-operand fast path (all generations) — looser tolerance.
    scores_bf16 = jax.block_until_ready(predictor_scores(xf, *params))
    assert jnp.allclose(scores_bf16, scores_ref, atol=1e-1, rtol=1e-1), \
        float(jnp.max(jnp.abs(scores_bf16 - scores_ref)))

    # 3) padded / multi-tile path: non-aligned B' and N exercise batch & token
    #    padding plus a multi-step (3x1) parallel grid.
    B2, N2 = 20, 20
    xf2 = jax.random.normal(kx2, (B2, N2, D), dtype=jnp.float32)
    s2 = jax.block_until_ready(
        predictor_scores(xf2, *params, mxu_dtype=jnp.float32, batch_tile=8))
    s2_ref = predictor_scores_ref(xf2, *params)
    assert s2.shape == (B2, N2), s2.shape
    assert jnp.allclose(s2, s2_ref, atol=1e-4, rtol=1e-4), \
        float(jnp.max(jnp.abs(s2 - s2_ref)))

    # 4) full VisualTokenSelection forward (f32 scores) vs plain-JAX reference.
    #    Loose tolerance: the perturbed top-k is discrete, a ~1e-6 score diff
    #    can flip a single sample's selection.
    out = jax.block_until_ready(
        visual_token_selection(x, params, kn, max_frames=max_frames, topk=k_sel,
                               mxu_dtype=jnp.float32))
    out_ref = visual_token_selection_ref(x, params, kn, max_frames=max_frames,
                                         topk=k_sel)
    assert out.shape == (bs, max_frames * (1 + k_sel), D), out.shape
    assert jnp.allclose(out, out_ref, atol=5e-2, rtol=5e-2), \
        float(jnp.max(jnp.abs(out - out_ref)))

    # 5) default (bf16-operand) full forward: exercise the fast path + sanity.
    out_fast = jax.block_until_ready(
        visual_token_selection(x, params, kn, max_frames=max_frames, topk=k_sel))
    assert out_fast.shape == out.shape
    assert bool(jnp.all(jnp.isfinite(out_fast)))

    print("KERNEL_OK")
</pallas_src>

<mosaic_0001>
module attributes {stable_mosaic.version = 11 : i64} {
  func.func @predictor_kernel(%arg0: i32, %arg1: i32, %arg2: memref<4x8x32xf32, #tpu.memory_space<vmem>>, %arg3: memref<4x16xf32, #tpu.memory_space<vmem>>, %arg4: memref<32x16xf32, #tpu.memory_space<vmem>>, %arg5: memref<1x16xf32, #tpu.memory_space<vmem>>, %arg6: memref<16x16xf32, #tpu.memory_space<vmem>>, %arg7: memref<1x16xf32, #tpu.memory_space<vmem>>, %arg8: memref<4x8xf32, #tpu.memory_space<vmem>>) attributes {dimension_semantics = [#tpu.dimension_semantics<parallel>, #tpu.dimension_semantics<parallel>], iteration_bounds = array<i64: 1, 1>, scalar_prefetch = 0 : i64, scratch_operands = 0 : i64, tpu.core_type = #tpu.core_type<tc>, window_params = [{transform_indices = @transform_0, window_bounds = array<i64: 4, 8, 32>}, {transform_indices = @transform_1, window_bounds = array<i64: 4, 16>}, {pipeline_mode = #tpu.pipeline_mode<synchronous>, transform_indices = @transform_2, window_bounds = array<i64: 32, 16>}, {pipeline_mode = #tpu.pipeline_mode<synchronous>, transform_indices = @transform_3, window_bounds = array<i64: 1, 16>}, {pipeline_mode = #tpu.pipeline_mode<synchronous>, transform_indices = @transform_4, window_bounds = array<i64: 16, 16>}, {pipeline_mode = #tpu.pipeline_mode<synchronous>, transform_indices = @transform_5, window_bounds = array<i64: 1, 16>}, {transform_indices = @transform_6, window_bounds = array<i64: 4, 8>}]} {
    %c0 = arith.constant 0 : index
    %c0_0 = arith.constant 0 : index
    %c0_1 = arith.constant 0 : index
    %0 = vector.load %arg2[%c0, %c0_0, %c0_1] : memref<4x8x32xf32, #tpu.memory_space<vmem>>, vector<4x8x32xf32>
    %1 = vector.shape_cast %0 : vector<4x8x32xf32> to vector<32x32xf32>
    %cst = arith.constant dense<0.000000e+00> : vector<32xf32>
    %2 = vector.multi_reduction <add>, %1, %cst [1] : vector<32x32xf32> to vector<32xf32>
    %3 = vector.shape_cast %2 : vector<32xf32> to vector<32x1xf32>
    %cst_2 = arith.constant 3.200000e+01 : f32
    %4 = vector.broadcast %cst_2 : f32 to vector<32x1xf32>
    %5 = arith.divf %3, %4 : vector<32x1xf32>
    %6 = vector.broadcast %5 : vector<32x1xf32> to vector<32x32xf32>
    %7 = arith.subf %1, %6 : vector<32x32xf32>
    %8 = arith.mulf %7, %7 : vector<32x32xf32>
    %cst_3 = arith.constant dense<0.000000e+00> : vector<32xf32>
    %9 = vector.multi_reduction <add>, %8, %cst_3 [1] : vector<32x32xf32> to vector<32xf32>
    %10 = vector.shape_cast %9 : vector<32xf32> to vector<32x1xf32>
    %cst_4 = arith.constant 3.200000e+01 : f32
    %11 = vector.broadcast %cst_4 : f32 to vector<32x1xf32>
    %12 = arith.divf %10, %11 : vector<32x1xf32>
    %cst_5 = arith.constant 9.99999974E-6 : f32
    %13 = vector.broadcast %cst_5 : f32 to vector<32x1xf32>
    %14 = arith.addf %12, %13 : vector<32x1xf32>
    %15 = math.rsqrt %14 : vector<32x1xf32>
    %16 = vector.broadcast %15 : vector<32x1xf32> to vector<32x32xf32>
    %17 = arith.mulf %7, %16 : vector<32x32xf32>
    %c0_6 = arith.constant 0 : index
    %c0_7 = arith.constant 0 : index
    %18 = vector.load %arg4[%c0_6, %c0_7] : memref<32x16xf32, #tpu.memory_space<vmem>>, vector<32x16xf32>
    %cst_8 = arith.constant dense<0.000000e+00> : vector<32x16xf32>
    %19 = tpu.matmul %17, %18, %cst_8 {dimension_numbers = #tpu.dot_dimension_numbers<[1], [0], [0], [1], [0, 0, 1, 1], [], []>} : vector<32x32xf32>, vector<32x16xf32>, vector<32x16xf32> -> vector<32x16xf32>
    %c0_9 = arith.constant 0 : index
    %c0_10 = arith.constant 0 : index
    %20 = vector.load %arg5[%c0_9, %c0_10] : memref<1x16xf32, #tpu.memory_space<vmem>>, vector<1x16xf32>
    %21 = vector.broadcast %20 : vector<1x16xf32> to vector<32x16xf32>
    %22 = arith.addf %19, %21 : vector<32x16xf32>
    %cst_11 = arith.constant 5.000000e-01 : f32
    %23 = vector.broadcast %cst_11 : f32 to vector<32x16xf32>
    %24 = arith.mulf %23, %22 : vector<32x16xf32>
    %cst_12 = arith.constant 0.707106769 : f32
    %25 = vector.broadcast %cst_12 : f32 to vector<32x16xf32>
    %26 = arith.mulf %22, %25 : vector<32x16xf32>
    %27 = math.erf %26 : vector<32x16xf32>
    %cst_13 = arith.constant 1.000000e+00 : f32
    %28 = vector.broadcast %cst_13 : f32 to vector<32x16xf32>
    %29 = arith.addf %28, %27 : vector<32x16xf32>
    %30 = arith.mulf %24, %29 : vector<32x16xf32>
    %c0_14 = arith.constant 0 : index
    %c0_15 = arith.constant 0 : index
    %31 = vector.load %arg6[%c0_14, %c0_15] : memref<16x16xf32, #tpu.memory_space<vmem>>, vector<16x16xf32>
    %cst_16 = arith.constant dense<0.000000e+00> : vector<32x16xf32>
    %32 = tpu.matmul %30, %31, %cst_16 {dimension_numbers = #tpu.dot_dimension_numbers<[1], [0], [0], [1], [0, 0, 1, 1], [], []>} : vector<32x16xf32>, vector<16x16xf32>, vector<32x16xf32> -> vector<32x16xf32>
    %33 = vector.shape_cast %32 : vector<32x16xf32> to vector<4x8x16xf32>
    %c0_17 = arith.constant 0 : index
    %c0_18 = arith.constant 0 : index
    %34 = vector.load %arg3[%c0_17, %c0_18] : memref<4x16xf32, #tpu.memory_space<vmem>>, vector<4x16xf32>
    %35 = vector.shape_cast %34 : vector<4x16xf32> to vector<4x1x16xf32>
    %36 = vector.broadcast %35 : vector<4x1x16xf32> to vector<4x8x16xf32>
    %37 = arith.addf %33, %36 : vector<4x8x16xf32>
    %cst_19 = arith.constant 5.000000e-01 : f32
    %38 = vector.broadcast %cst_19 : f32 to vector<4x8x16xf32>
    %39 = arith.mulf %38, %37 : vector<4x8x16xf32>
    %cst_20 = arith.constant 0.707106769 : f32
    %40 = vector.broadcast %cst_20 : f32 to vector<4x8x16xf32>
    %41 = arith.mulf %37, %40 : vector<4x8x16xf32>
    %42 = math.erf %41 : vector<4x8x16xf32>
    %cst_21 = arith.constant 1.000000e+00 : f32
    %43 = vector.broadcast %cst_21 : f32 to vector<4x8x16xf32>
    %44 = arith.addf %43, %42 : vector<4x8x16xf32>
    %45 = arith.mulf %39, %44 : vector<4x8x16xf32>
    %c0_22 = arith.constant 0 : index
    %c0_23 = arith.constant 0 : index
    %46 = vector.load %arg7[%c0_22, %c0_23] : memref<1x16xf32, #tpu.memory_space<vmem>>, vector<1x16xf32>
    %47 = vector.shape_cast %46 : vector<1x16xf32> to vector<1x1x16xf32>
    %48 = vector.broadcast %47 : vector<1x1x16xf32> to vector<4x8x16xf32>
    %49 = arith.mulf %45, %48 : vector<4x8x16xf32>
    %cst_24 = arith.constant dense<0.000000e+00> : vector<4x8xf32>
    %50 = vector.multi_reduction <add>, %49, %cst_24 [2] : vector<4x8x16xf32> to vector<4x8xf32>
    %51 = math.tanh %50 : vector<4x8xf32>
    %c0_25 = arith.constant 0 : index
    %c0_26 = arith.constant 0 : index
    %52 = vector.load %arg8[%c0_25, %c0_26] : memref<4x8xf32, #tpu.memory_space<vmem>>, vector<4x8xf32>
    tpu.vector_store %arg8[%c0_25, %c0_26], %51 {strides = array<i32>} : memref<4x8xf32, #tpu.memory_space<vmem>>, vector<4x8xf32>,
    return
  }
  func.func @transform_0(%arg0: i32, %arg1: i32) -> (i32, i32, i32) {
    %c0_i32 = arith.constant 0 : i32
    %c0_i32_0 = arith.constant 0 : i32
    return %arg0, %arg1, %c0_i32 : i32, i32, i32
  }
  func.func @transform_1(%arg0: i32, %arg1: i32) -> (i32, i32) {
    %c0_i32 = arith.constant 0 : i32
    %c0_i32_0 = arith.constant 0 : i32
    return %arg0, %c0_i32 : i32, i32
  }
  func.func @transform_2(%arg0: i32, %arg1: i32) -> (i32, i32) {
    %c0_i32 = arith.constant 0 : i32
    %c0_i32_0 = arith.constant 0 : i32
    %c0_i32_1 = arith.constant 0 : i32
    return %c0_i32, %c0_i32_0 : i32, i32
  }
  func.func @transform_3(%arg0: i32, %arg1: i32) -> (i32, i32) {
    %c0_i32 = arith.constant 0 : i32
    %c0_i32_0 = arith.constant 0 : i32
    %c0_i32_1 = arith.constant 0 : i32
    return %c0_i32, %c0_i32_0 : i32, i32
  }
  func.func @transform_4(%arg0: i32, %arg1: i32) -> (i32, i32) {
    %c0_i32 = arith.constant 0 : i32
    %c0_i32_0 = arith.constant 0 : i32
    %c0_i32_1 = arith.constant 0 : i32
    return %c0_i32, %c0_i32_0 : i32, i32
  }
  func.func @transform_5(%arg0: i32, %arg1: i32) -> (i32, i32) {
    %c0_i32 = arith.constant 0 : i32
    %c0_i32_0 = arith.constant 0 : i32
    %c0_i32_1 = arith.constant 0 : i32
    return %c0_i32, %c0_i32_0 : i32, i32
  }
  func.func @transform_6(%arg0: i32, %arg1: i32) -> (i32, i32) {
    %c0_i32 = arith.constant 0 : i32
    return %arg0, %arg1 : i32, i32
  }
}

</mosaic_0001>

<bundles_post_ra>
// kernel: tpu_custom_call.1
= control target key start
LH: loop header
LB: loop body
LE: loop exit
PB: predicated region body
PF: predicated region fallthrough
CT: control target
= control target key end

     0   :  { %11 = vsyncpa [#allocation3], 0  ;;  %s733_s0 = inlined_call_operand.vmem [shape: f32[4,8,32], index: 0, kind: input, shape index: {}]   ;;  %s734_s1 = inlined_call_operand.hbm [shape: f32[4,16], index: 1, kind: input, shape index: {}]   ;;  %s735_s2 = inlined_call_operand.vmem [shape: f32[32,16], index: 2, kind: input, shape index: {}]   ;;  %s736_s3 = inlined_call_operand.vmem [shape: f32[1,16], index: 3, kind: input, shape index: {}]   ;;  %s737_s4 = inlined_call_operand.vmem [shape: f32[16,16], index: 4, kind: input, shape index: {}]   ;;  %s738_s5 = inlined_call_operand.vmem [shape: f32[1,16], index: 5, kind: input, shape index: {}]   ;;  %s739_s6 = inlined_call_operand.hbm [shape: f32[4,8], index: 6, kind: output, shape index: {}]  }
   0x1   :  { %12 = vsyncpa [#allocation4], 0  ;;  %s609_s21 = smov [#allocation2]   ;;  %s561_s25 = scalar_lea.hbm %s734_s1, 64 }
   0x2   :  { %s21_s22 = sshll.u32 %s609_s21, 4  ;;  %p562_p0 = scmp.ne.s32.totalorder %s734_s1, %s561_s25  ;;  %s22_s22 = int_to_ptr.vmem [resolvable:$true] %s21_s22 }
   0x3   :  { %p565_p1 = scmp.lt.u32.totalorder %s561_s25, %s734_s1 }
   0x5   :  { %p567_p2 = pnand %p565_p1, %p562_p0 }
   0x7   :  { %570 = shalt.err (!%p567_p2)
}
   0x8   :  { %s571_s30 = scalar_lea.vmem %s22_s22, 64  ;;  %p576_p4 = scmp.lt.s32.totalorder %s22_s22, %s22_s22 }
   0x9   :  { %p572_p3 = scmp.ne.s32.totalorder %s22_s22, %s571_s30  ;;  %p577_p5 = scmp.lt.s32.totalorder %s571_s30, %s571_s30 }
   0xb   :  { %p578_p6 = por %p577_p5, %p576_p4 }
   0xd   :  { %p579_p7 = pnand %p578_p6, %p572_p3 }
   0xf   :  { %582 = shalt.err (!%p579_p7)
}
  0x10   :  { %24 = dma.hbm_to_vmem [thread:$0]  %s734_s1, 64, %s22_s22, [#allocation3]  }
  0x11   :  { %605 = dma.done.wait [#allocation3], 64  }
  0x12   :  { %606 = vsyncadd [#allocation3], 4294967232  ;;  %vm40_vm0 = vcmask 261120   ;;  %v36_v0 = vld [vmem:[%s733_s0] sm:$0xff]  ;;  %v38_v1 = vld [vmem:[%s733_s0 + $0x10] sm:$0xff]  ;;  %vm224_vm1 = vcmask 130048  }
  0x13   :  { %v37_v2 = vld [vmem:[%s733_s0 + $0x8] sm:$0xff]  ;;  %v41_v3 = vsel %vm40_vm0, %v36_v0, 0.0  ;;  %v47_v4 = vsel %vm40_vm0, %v38_v1, 0.0  ;;  %v39_v5 = vld [vmem:[%s733_s0 + $0x18] sm:$0xff]  ;;  %v94_v28 = vld [vmem:[%s735_s2] sm:$0xff]  ;;  %vm441_vm2 = vcmask 1041409  }
  0x14   :  { %42 = vadd.xlane.f32.xlu0 %v41_v3  ;;  %48 = vadd.xlane.f32.xlu1 %v47_v4  ;;  %v44_v6 = vsel %vm40_vm0, %v37_v2, 0.0  ;;  %v50_v7 = vsel %vm40_vm0, %v39_v5, 0.0  ;;  %v95_v29 = vld [vmem:[%s735_s2 + $0x8] sm:$0xff]  ;;  %v96_v31 = vld [vmem:[%s735_s2 + $0x10] sm:$0xff]  ;;  %v97_v32 = vld [vmem:[%s735_s2 + $0x18] sm:$0xff]  ;;  %vm443_vm3 = vcmask 1042434  }
  0x15   :  { %v514_v30 = vpack.c.bf16 %v95_v29, %v94_v28  ;;  %v518_v33 = vpack.c.bf16 %v97_v32, %v96_v31  ;;  %v222_v54 = vld [vmem:[%s737_s4] sm:$0xff]  ;;  %v223_v55 = vld [vmem:[%s737_s4 + $0x8] sm:$0xff]  ;;  %vm445_vm4 = vcmask 1043459   ;;  %vm448_vm5 = vcmask 60416  }
  0x16   :  { %v522_v56 = vpack.c.bf16 %v223_v55, %v222_v54  ;;  %v465_v57 = vld [vmem:[%s736_s3] ss:$0 sm:$0xff] }
  0x17   :  { %515 = vmatprep.subr.bf16.mxu0 %v514_v30  ;;  %v474_v29 = vld.sshfl [vmem:[#allocation2] sm:$0x33 pattern:$0x75316420] }
  0x18   :  { %45 = vadd.xlane.f32.xlu0 %v44_v6  ;;  %51 = vadd.xlane.f32.xlu1 %v50_v7 }
  0x19   :  { %517 = vmatpush3.bf16.msra.mxu0 %v514_v30  ;;  %523 = vmatprep.subr.bf16.mxu1 %v522_v56  ;;  %v331_v30 = vcombine.high %v474_v29, %v474_v29 }
  0x1a   :  { %519 = vmatprep.subr.bf16.mxu0 %v518_v33  ;;  %525 = vmatpush3.bf16.msra.mxu1 %v522_v56 }
  0x1d   :  { %521 = vmatpush3.bf16.msra.mxu0 %v518_v33 }
  0xa1   :  { %v43_v8 = vpop.xlane.xlu0 %42  ;;  %v49_v9 = vpop.xlane.xlu1 %48 }
  0xa2   :  { %v54_v10 = vmul.f32 0.03125, %v43_v8  ;;  %v56_v11 = vmul.f32 0.03125, %v49_v9 }
  0xa4   :  { %v58_v12 = vsub.f32 %v36_v0, %v54_v10  ;;  %v60_v13 = vsub.f32 %v38_v1, %v56_v11 }
  0xa5   :  { %v46_v14 = vpop.xlane.xlu0 %45  ;;  %v52_v15 = vpop.xlane.xlu1 %51 }
  0xa6   :  { %v55_v16 = vmul.f32 0.03125, %v46_v14  ;;  %v57_v17 = vmul.f32 0.03125, %v52_v15  ;;  %v62_v18 = vmul.f32 %v58_v12, %v58_v12  ;;  %v64_v19 = vmul.f32 %v60_v13, %v60_v13 }
  0xa8   :  { %v59_v20 = vsub.f32 %v37_v2, %v55_v16  ;;  %v61_v21 = vsub.f32 %v39_v5, %v57_v17  ;;  %v66_v22 = vsel %vm40_vm0, %v62_v18, 0.0  ;;  %v72_v23 = vsel %vm40_vm0, %v64_v19, 0.0 }
  0xa9   :  { %67 = vadd.xlane.f32.xlu0 %v66_v22  ;;  %v335_v22 = vlaneseq }
  0xaa   :  { %v63_v24 = vmul.f32 %v59_v20, %v59_v20  ;;  %v65_v25 = vmul.f32 %v61_v21, %v61_v21 }
  0xac   :  { %v69_v26 = vsel %vm40_vm0, %v63_v24, 0.0  ;;  %v75_v27 = vsel %vm40_vm0, %v65_v25, 0.0  ;;  %v424_v24 = vand.u32 127, %v335_v22 }
  0xad   :  { %73 = vadd.xlane.f32.xlu0 %v72_v23  ;;  %70 = vadd.xlane.f32.xlu1 %v69_v26  ;;  %v336_v23 = vshrl.u32 %v335_v22, 7  ;;  %v610_v26 = vmov 1966171168  }
  0xaf   :  { %v708_v25 = vsub.s32 %v424_v24, %v336_v23  ;;  %v350_v33 = vsub.s32 0, %v336_v23 }
  0xb1   :  { %76 = vadd.xlane.f32.xlu1 %v75_v27  ;;  %v333_v27 = vunpack.c.l.s4 %v610_v26 }
  0xb3   :  { %v334_v28 = vunpack.c.0.s8 %v333_v27 }
  0xb5   :  { %v337_v31 = vsub.s32 %v334_v28, %v336_v23 }
  0xb7   :  { %v345_v32 = vrot.slane %v331_v30, %v337_v31 }
 0x136   :  { %v68_v34 = vpop.xlane.xlu0 %67 }
 0x137   :  { %v78_v35 = vmul.f32 0.03125, %v68_v34  ;;  %v338_v34 = vrot.slane %v474_v29, %v337_v31 }
 0x139   :  { %v82_v36 = vadd.f32 1e-05, %v78_v35  ;;  %v355_v35 = vrot.slane %v345_v32, %v350_v33 }
 0x13a   :  { %v71_v37 = vpop.xlane.xlu1 %70  ;;  %v74_v38 = vpop.xlane.xlu0 %73 }
 0x13b   :  { %529 = vrsqrt.f32 %v82_v36  ;;  %v79_v39 = vmul.f32 0.03125, %v71_v37  ;;  %v80_v40 = vmul.f32 0.03125, %v74_v38  ;;  %v347_v36 = vcombine.high %v345_v32, %v345_v32 }
 0x13c   :  { %v351_v37 = vrot.slane %v338_v34, %v350_v33  ;;  %v346_v38 = vcombine.high %v338_v34, %v338_v34 }
 0x13d   :  { %v83_v41 = vadd.f32 1e-05, %v79_v39  ;;  %v84_v42 = vadd.f32 1e-05, %v80_v40 }
 0x13e   :  { %v77_v43 = vpop.xlane.xlu1 %76 }
 0x13f   :  { %531 = vrsqrt.f32 %v83_v41  ;;  %v81_v44 = vmul.f32 0.03125, %v77_v43 }
 0x140   :  { %533 = vrsqrt.f32 %v84_v42  ;;  %v363_v42 = vrot.slane %v347_v36, %v350_v33 }
 0x141   :  { %v85_v45 = vadd.f32 1e-05, %v81_v44  ;;  %v359_v44 = vrot.slane %v346_v38, %v350_v33 }
 0x143   :  { %535 = vrsqrt.f32 %v85_v45 }
 0x145   :  { %v530_v46 = vpop.eup %529 }
 0x146   :  { %v90_v47 = vmul.f32 %v530_v46, %v58_v12 }
 0x148   :  { %498 = vmatprep.mubr.msk.f32.mxu0 %vm40_vm0, %v90_v47 }
 0x149   :  { %v532_v48 = vpop.eup %531 }
 0x14a   :  { %v534_v49 = vpop.eup %533  ;;  %v91_v50 = vmul.f32 %v532_v48, %v59_v20 }
 0x14b   :  { %v92_v51 = vmul.f32 %v534_v49, %v60_v13 }
 0x14c   :  { %499 = vmatmul.mubr.msk.f32.vlgmr.msra.gmra.mrb[0].mxu0 %vm40_vm0, %v91_v50 }
 0x14d   :  { %v536_v52 = vpop.eup %535  ;;  %501 = vmatprep.mubr.msk.f32.mxu0 %vm40_vm0, %v92_v51 }
 0x14e   :  { %v93_v53 = vmul.f32 %v536_v52, %v61_v21 }
 0x150   :  { %502 = vmatmul.mubr.msk.f32.gmra.mrb[2].mxu0 %vm40_vm0, %v93_v53 }
 0x21f   :  { %v500_v58 = vpop.f32.mrb[0].mxu0 }
 0x220   :  { %v189_v59 = vadd.f32 %v500_v58, %v465_v57  ;;  %v183_v60 = vpop.f32.mrb[1].mxu0 }
 0x221   :  { %v184_v61 = vadd.f32 %v465_v57, %v183_v60 }
 0x222   :  { %v207_v62 = vmul.f32 0.70710677, %v189_v59  ;;  %v203_v11 = vmul.f32 0.5, %v189_v59  ;;  %v475_v59 = vld [vmem:[%s738_s5] ss:$0 sm:$0xff]  ;;  %s611_s5 = smov [#allocation5]  }
 0x223   :  { %v206_v63 = vmul.f32 0.70710677, %v184_v61  ;;  %v503_v0 = vpop.f32.mrb[2].mxu0  ;;  %v202_v9 = vmul.f32 0.5, %v184_v61  ;;  %s456_s28 = sshll.u32 %s611_s5, 4  ;;  %s457_s28 = int_to_ptr.vmem [resolvable:$true] %s456_s28 }
 0x224   :  { %537 = verf.f32 %v207_v62  ;;  %v199_v1 = vadd.f32 %v503_v0, %v465_v57  ;;  %v193_v2 = vpop.f32.mrb[3].mxu0  ;;  %s583_s29 = scalar_lea.vmem %s457_s28, 64  ;;  %p588_p9 = scmp.lt.s32.totalorder %s457_s28, %s457_s28 }
 0x225   :  { %539 = verf.f32 %v206_v63  ;;  %v194_v3 = vadd.f32 %v465_v57, %v193_v2  ;;  %p584_p8 = scmp.ne.s32.totalorder %s457_s28, %s583_s29  ;;  %p589_p10 = scmp.lt.s32.totalorder %s583_s29, %s583_s29 }
 0x226   :  { %v209_v4 = vmul.f32 0.70710677, %v199_v1  ;;  %v205_v19 = vmul.f32 0.5, %v199_v1 }
 0x227   :  { %v208_v5 = vmul.f32 0.70710677, %v194_v3  ;;  %v204_v17 = vmul.f32 0.5, %v194_v3  ;;  %p590_p11 = por %p589_p10, %p588_p9 }
 0x228   :  { %541 = verf.f32 %v209_v4 }
 0x229   :  { %543 = verf.f32 %v208_v5  ;;  %p591_p12 = pnand %p590_p11, %p584_p8 }
 0x22e   :  { %v538_v6 = vpop.eup %537 }
 0x22f   :  { %v540_v7 = vpop.eup %539  ;;  %v215_v8 = vadd.f32 1.0, %v538_v6 }
 0x230   :  { %v214_v10 = vadd.f32 1.0, %v540_v7 }
 0x231   :  { %v219_v15 = vmul.f32 %v215_v8, %v203_v11 }
 0x232   :  { %v542_v12 = vpop.eup %541  ;;  %v218_v13 = vmul.f32 %v214_v10, %v202_v9 }
 0x233   :  { %v544_v14 = vpop.eup %543  ;;  %v217_v16 = vadd.f32 1.0, %v542_v12 }
 0x234   :  { %v216_v18 = vadd.f32 1.0, %v544_v14  ;;  %508 = vmatprep.mubr.msk.f32.mxu1 %vm224_vm1, %v218_v13 }
 0x235   :  { %509 = vmatmul.mubr.msk.f32.vlgmr.msra.gmra.mrb[0].mxu1 %vm224_vm1, %v219_v15  ;;  %v221_v21 = vmul.f32 %v217_v16, %v205_v19 }
 0x236   :  { %v220_v20 = vmul.f32 %v216_v18, %v204_v17 }
 0x238   :  { %511 = vmatprep.mubr.msk.f32.mxu1 %vm224_vm1, %v220_v20 }
 0x239   :  { %512 = vmatmul.mubr.msk.f32.gmra.mrb[2].mxu1 %vm224_vm1, %v221_v21 }
 0x308   :  { %v510_v39 = vpop.f32.mrb[0].mxu1 }
 0x309   :  { %v369_v40 = vadd.f32 %v510_v39, %v355_v35  ;;  %v303_v41 = vpop.f32.mrb[1].mxu1 }
 0x30a   :  { %v368_v43 = vadd.f32 %v351_v37, %v303_v41 }
 0x30b   :  { %v377_v45 = vmul.f32 0.70710677, %v369_v40  ;;  %v373_v55 = vmul.f32 0.5, %v369_v40 }
 0x30c   :  { %v376_v46 = vmul.f32 0.70710677, %v368_v43  ;;  %v513_v47 = vpop.f32.mrb[2].mxu1  ;;  %v372_v57 = vmul.f32 0.5, %v368_v43 }
 0x30d   :  { %545 = verf.f32 %v377_v45  ;;  %v371_v48 = vadd.f32 %v513_v47, %v363_v42  ;;  %v313_v49 = vpop.f32.mrb[3].mxu1 }
 0x30e   :  { %547 = verf.f32 %v376_v46  ;;  %v370_v50 = vadd.f32 %v359_v44, %v313_v49 }
 0x30f   :  { %v379_v51 = vmul.f32 0.70710677, %v371_v48  ;;  %v375_v0 = vmul.f32 0.5, %v371_v48 }
 0x310   :  { %v378_v52 = vmul.f32 0.70710677, %v370_v50  ;;  %v374_v3 = vmul.f32 0.5, %v370_v50 }
 0x311   :  { %549 = verf.f32 %v379_v51 }
 0x312   :  { %551 = verf.f32 %v378_v52 }
 0x317   :  { %v546_v53 = vpop.eup %545 }
 0x318   :  { %v548_v54 = vpop.eup %547  ;;  %v385_v56 = vadd.f32 1.0, %v546_v53 }
 0x319   :  { %v384_v58 = vadd.f32 1.0, %v548_v54 }
 0x31a   :  { %v389_v60 = vmul.f32 %v385_v56, %v373_v55 }
 0x31b   :  { %v550_v61 = vpop.eup %549  ;;  %v388_v62 = vmul.f32 %v384_v58, %v372_v57 }
 0x31c   :  { %v552_v63 = vpop.eup %551  ;;  %v387_v1 = vadd.f32 1.0, %v550_v61  ;;  %v400_v2 = vmul.f32 %v475_v59, %v389_v60 }
 0x31d   :  { %v386_v4 = vadd.f32 1.0, %v552_v63  ;;  %v399_v5 = vmul.f32 %v475_v59, %v388_v62 }
 0x31e   :  { %v406_v6 = vsel %vm224_vm1, %v400_v2, 0.0  ;;  %v391_v7 = vmul.f32 %v387_v1, %v375_v0 }
 0x31f   :  { %407 = vadd.xlane.f32.xlu1 %v406_v6  ;;  %v403_v8 = vsel %vm224_vm1, %v399_v5, 0.0  ;;  %v390_v9 = vmul.f32 %v386_v4, %v374_v3 }
 0x320   :  { %404 = vadd.xlane.f32.xlu0 %v403_v8  ;;  %v402_v10 = vmul.f32 %v475_v59, %v391_v7 }
 0x321   :  { %v401_v11 = vmul.f32 %v475_v59, %v390_v9 }
 0x322   :  { %v412_v12 = vsel %vm224_vm1, %v402_v10, 0.0 }
 0x323   :  { %413 = vadd.xlane.f32.xlu1 %v412_v12  ;;  %v409_v13 = vsel %vm224_vm1, %v401_v11, 0.0 }
 0x324   :  { %410 = vadd.xlane.f32.xlu0 %v409_v13 }
 0x3ac   :  { %v408_v14 = vpop.xlane.xlu1 %407 }
 0x3ad   :  { %553 = vtanh.f32 %v408_v14  ;;  %v405_v15 = vpop.xlane.xlu0 %404 }
 0x3ae   :  { %555 = vtanh.f32 %v405_v15 }
 0x3b0   :  { %v414_v16 = vpop.xlane.xlu1 %413 }
 0x3b1   :  { %557 = vtanh.f32 %v414_v16  ;;  %v411_v17 = vpop.xlane.xlu0 %410 }
 0x3b2   :  { %559 = vtanh.f32 %v411_v17 }
 0x3b7   :  { %v554_v18 = vpop.eup %553 }
 0x3b8   :  { %v556_v19 = vpop.eup %555  ;;  %v432_v20 = vrot.slane %v554_v18, %v708_v25 }
 0x3b9   :  { %v428_v21 = vrot.slane %v556_v19, %v708_v25 }
 0x3bb   :  { %v558_v22 = vpop.eup %557  ;;  %v442_v27 = vsel %vm441_vm2, %v432_v20, %v428_v21 }
 0x3bc   :  { %v560_v23 = vpop.eup %559  ;;  %v440_v26 = vrot.slane %v558_v22, %v708_v25 }
 0x3bd   :  { %v436_v24 = vrot.slane %v560_v23, %v708_v25 }
 0x3bf   :  { %v444_v28 = vsel %vm443_vm3, %v436_v24, %v442_v27 }
 0x3c0   :  { %v446_v29 = vsel %vm445_vm4, %v440_v26, %v444_v28 }
 0x3c1   :  { %449 = vst.msk [vmem:[#allocation5] sm:$0xf] %vm448_vm5, %v446_v29 }
 0x3c2   :  { %594 = shalt.err (!%p591_p12)
}
 0x3c3   :  { %s595_s8 = scalar_lea.hbm %s739_s6, 64 }
 0x3c4   :  { %p596_p13 = scmp.ne.s32.totalorder %s739_s6, %s595_s8  ;;  %p599_p0 = scmp.lt.u32.totalorder %s595_s8, %s739_s6 }
 0x3c6   :  { %p601_p1 = pnand %p599_p0, %p596_p13 }
 0x3c8   :  { %604 = shalt.err (!%p601_p1)
}
 0x3c9   :  { %459 = dma.vmem_to_hbm [thread:$0]  %s457_s28, 64, %s739_s6, [#allocation4]  }
 0x3ca   :  { %607 = dma.done.wait [#allocation4], 64  }
 0x3cb   :  { %608 = vsyncadd [#allocation4], 4294967232 }
 0x3cc   :  { %463 = vsyncpa [#allocation3], 1 }
 0x3cd   :  { %464 = vsyncpa [#allocation4], 1 }

</bundles_post_ra>
